<compile_context>
chip_gen: v7x
topology: tpu7x:2x2x1
jax: 0.10.0
libtpu: 0.0.40
codegen_flags: <defaults>
</compile_context>

<pallas_src>
import functools
import math

import jax
import jax.numpy as jnp
from jax import lax
from jax.experimental import pallas as pl
from jax.experimental.pallas import tpu as pltpu


# ---------------------------------------------------------------------------
# Helpers
# ---------------------------------------------------------------------------
def _pick_tile(dim, cap, mult):
    """Largest tile <= cap that divides dim and is a multiple of `mult`;
    falls back to the full dim (always legal for TPU (8,128) tiling)."""
    if dim <= cap:
        return dim
    t = (cap // mult) * mult
    while t >= mult:
        if dim % t == 0:
            return t
        t -= mult
    return dim


def _vmem_limit_bytes(frac=0.75, default=48 << 20):
    """Per-generation VMEM limit (≈96 MiB on v5e/v6e, ≈48 MiB on v7x)."""
    try:
        info = pltpu.get_tpu_info()
        cap = getattr(info, "vmem_capacity_bytes", None)
        if cap:
            return int(cap * frac)
    except Exception:
        pass
    return default


# ---------------------------------------------------------------------------
# Tiled matmul + bias kernel: out = x @ w^T + b  (w kept in torch (N, K) layout)
# ---------------------------------------------------------------------------
def _matmul_bias_t_kernel(x_ref, w_ref, b_ref, o_ref, acc_ref):
    @pl.when(pl.program_id(2) == 0)
    def _():
        acc_ref[...] = jnp.zeros_like(acc_ref)

    # x (tm, tk) @ w (tn, tk)^T -> (tm, tn); no wrapper-side w.T materialization.
    acc_ref[...] += lax.dot_general(
        x_ref[...], w_ref[...],
        dimension_numbers=(((1,), (1,)), ((), ())),
        preferred_element_type=jnp.float32,
    )

    @pl.when(pl.program_id(2) == pl.num_programs(2) - 1)
    def _():
        o_ref[...] = (acc_ref[...] + b_ref[...].astype(jnp.float32)).astype(o_ref.dtype)


def matmul_bias_t(x, w, b, *, tm_cap=256, tk_cap=512, tn_cap=256):
    """out[M, N] = x[M, K] @ w[N, K]^T + b[N] with f32 MXU accumulation."""
    M, K = x.shape
    N, K2 = w.shape
    assert K == K2 and b.shape == (N,)
    tm = _pick_tile(M, tm_cap, 8)
    tk = _pick_tile(K, tk_cap, 128)
    tn = _pick_tile(N, tn_cap, 128)
    b2 = b.reshape(1, N)

    return pl.pallas_call(
        _matmul_bias_t_kernel,
        out_shape=jax.ShapeDtypeStruct((M, N), x.dtype),
        grid=(M // tm, N // tn, K // tk),
        in_specs=[
            pl.BlockSpec((tm, tk), lambda i, j, k: (i, k)),
            pl.BlockSpec((tn, tk), lambda i, j, k: (j, k)),
            pl.BlockSpec((1, tn), lambda i, j, k: (0, j)),
        ],
        out_specs=pl.BlockSpec((tm, tn), lambda i, j, k: (i, j)),
        scratch_shapes=[pltpu.VMEM((tm, tn), jnp.float32)],
        compiler_params=pltpu.CompilerParams(
            dimension_semantics=("parallel", "parallel", "arbitrary"),
        ),
    )(x, w, b2)


# ---------------------------------------------------------------------------
# Fused scaled-dot-product attention over the packed qkv tensor
# ---------------------------------------------------------------------------
def _attention_kernel(mask_ref, qkv_ref, o_ref, *, scale, head_dim, hb,
                      n_groups, tq, embed):
    # Blocks: mask (tq, SK) int8 ; qkv (1, SK, 3E) ; out (1, tq, hb*d).
    d = head_dim
    E = embed
    qi = pl.program_id(2)
    q_start = pl.multiple_of(qi * tq, tq)

    masked = mask_ref[...] != 0               # True = not allowed to attend
    neg = jnp.float32(-1e30)                  # ≙ torch's float('-inf') fill

    if n_groups == 1:
        group_col = 0                         # static column offsets (common case)
    else:
        group_col = pl.program_id(1) * (hb * d)

    for hh in range(hb):                      # unrolled over fused heads
        c0 = group_col + hh * d

        # scale folded into the (tq, d) q tile instead of the (tq, SK) scores
        qh = qkv_ref[0, pl.ds(q_start, tq), pl.ds(c0, d)].astype(jnp.float32)
        qh = qh * jnp.float32(scale)
        kh = qkv_ref[0, :, pl.ds(E + c0, d)].astype(jnp.float32)       # (SK, d)
        vh = qkv_ref[0, :, pl.ds(2 * E + c0, d)].astype(jnp.float32)   # (SK, d)

        s = lax.dot_general(qh, kh, (((1,), (1,)), ((), ())),
                            preferred_element_type=jnp.float32)        # (tq, SK)
        s = jnp.where(masked, neg, s)

        # Numerically-stable softmax over the key axis (kept whole in-block).
        m = jnp.max(s, axis=-1, keepdims=True)
        e = jnp.exp(s - m)
        denom = jnp.sum(e, axis=-1, keepdims=True)

        ctx = jnp.dot(e, vh, preferred_element_type=jnp.float32)       # (tq, d)
        # Normalization deferred past PV: a (tq, d) mul, not a (tq, SK) one.
        ctx = ctx * pl.reciprocal(denom, approx=True)

        o_ref[0, :, hh * d:(hh + 1) * d] = ctx.astype(o_ref.dtype)


def mha_attention(qkv, mask_bool, num_heads, *, block_q=None, block_h=None):
    """qkv: (B, L, 3E) packed q|k|v (batch-major). Returns context (B, L, E)."""
    B, L, E3 = qkv.shape
    E = E3 // 3
    assert 3 * E == E3 and E % num_heads == 0
    d = E // num_heads
    SQ = SK = L
    scale = 1.0 / math.sqrt(d)

    if mask_bool is None:
        mask_i8 = jnp.zeros((SQ, SK), dtype=jnp.int8)
    else:
        assert mask_bool.shape == (SQ, SK), f"bad mask shape {mask_bool.shape}"
        mask_i8 = mask_bool.astype(jnp.int8)  # int8: 4x less mask HBM traffic

    tq = block_q or _pick_tile(SQ, 256, 8)

    if block_h is not None:
        hb = block_h
    else:
        hb = num_heads
        # Only split heads when the smaller group keeps a 128-lane-aligned
        # (rule-safe, lane-dense) output block and per-step score temporaries
        # would otherwise be large.
        while hb % 2 == 0 and ((hb // 2) * d) % 128 == 0 and hb * tq * SK * 4 > (8 << 20):
            hb //= 2
    assert num_heads % hb == 0
    assert hb == num_heads or (hb * d) % 128 == 0
    n_groups = num_heads // hb

    # qkv block index depends only on b -> DMA'd exactly once per batch and
    # skipped across head-group / q-tile steps; only the tiny int8 mask block
    # is re-fetched per q tile.
    grid = (B, n_groups, SQ // tq)

    kernel = functools.partial(
        _attention_kernel, scale=scale, head_dim=d, hb=hb,
        n_groups=n_groups, tq=tq, embed=E)

    # TODO(synk): for very long SK the full-SK softmax block should switch to a
    # flash-style online-softmax SK tiling to stay SK-independent in VMEM.
    return pl.pallas_call(
        kernel,
        out_shape=jax.ShapeDtypeStruct((B, SQ, E), qkv.dtype),
        grid=grid,
        in_specs=[
            pl.BlockSpec((tq, SK), lambda b, hi, qi: (qi, 0)),
            pl.BlockSpec((1, SK, 3 * E), lambda b, hi, qi: (b, 0, 0)),
        ],
        out_specs=pl.BlockSpec((1, tq, hb * d), lambda b, hi, qi: (b, qi, hi)),
        compiler_params=pltpu.CompilerParams(
            dimension_semantics=("parallel", "parallel", "parallel"),
            vmem_limit_bytes=_vmem_limit_bytes(),
        ),
    )(mask_i8, qkv)


# ---------------------------------------------------------------------------
# Full TorchMHA forward (nn.MultiheadAttention, batch_first=False, eval mode)
# ---------------------------------------------------------------------------
def torch_mha_forward(x, attention_mask, w_in, b_in, w_out, b_out, num_heads):
    L, B, E = x.shape
    assert E % num_heads == 0

    # Batch-major for the whole pipeline (one pass over the small input tensor).
    xb = jnp.swapaxes(x, 0, 1).reshape(B * L, E)

    # in_proj: qkv = x @ W_in^T + b_in (W_in read untransposed in-kernel).
    qkv = matmul_bias_t(xb, w_in, b_in)                           # (B*L, 3E)

    # Fused attention straight off the packed qkv tensor; output (B, L, E) is
    # already the row layout out_proj needs (no head split/merge transposes).
    # TODO(synk): attention-probability dropout (p=0.1) is training-mode only;
    # this implements the eval()/inference forward.
    ctx = mha_attention(qkv.reshape(B, L, 3 * E), attention_mask, num_heads)

    # out_proj
    out = matmul_bias_t(ctx.reshape(B * L, E), w_out, b_out)      # (B*L, E)
    return jnp.swapaxes(out.reshape(B, L, E), 0, 1)               # (L, B, E)


# ---------------------------------------------------------------------------
# Pure-JAX reference (mirrors F.multi_head_attention_forward, eval mode)
# ---------------------------------------------------------------------------
def _reference_mha(x, attention_mask, w_in, b_in, w_out, b_out, num_heads):
    L, B, E = x.shape
    d = E // num_heads
    qkv = x @ w_in.T + b_in
    q, k, v = jnp.split(qkv, 3, axis=-1)

    def split_heads(t):
        return t.reshape(L, B, num_heads, d).transpose(1, 2, 0, 3)

    q, k, v = split_heads(q), split_heads(k), split_heads(v)
    s = jnp.einsum("bhqd,bhkd->bhqk", q, k) / math.sqrt(d)
    if attention_mask is not None:
        s = jnp.where(attention_mask[None, None], -jnp.inf, s)
    p = jax.nn.softmax(s, axis=-1)
    o = jnp.einsum("bhqk,bhkd->bhqd", p, v)
    o = o.transpose(2, 0, 1, 3).reshape(L * B, E)
    return (o @ w_out.T + b_out).reshape(L, B, E)


if __name__ == "__main__":
    # Small shapes consistent with the module: seq=8, batch=2, hidden=32, heads=4.
    L, B, E, H = 8, 2, 32, 4
    key = jax.random.PRNGKey(0)
    kx, kwi, kbi, kwo, kbo = jax.random.split(key, 5)

    x = jax.random.normal(kx, (L, B, E), dtype=jnp.float32)
    w_in = jax.random.normal(kwi, (3 * E, E), dtype=jnp.float32) / math.sqrt(E)
    b_in = 0.02 * jax.random.normal(kbi, (3 * E,), dtype=jnp.float32)
    w_out = jax.random.normal(kwo, (E, E), dtype=jnp.float32) / math.sqrt(E)
    b_out = 0.02 * jax.random.normal(kbo, (E,), dtype=jnp.float32)

    # Boolean attn_mask [L, S] (True = masked); causal for a deterministic demo.
    causal_mask = jnp.triu(jnp.ones((L, L), dtype=bool), k=1)

    out = torch_mha_forward(x, causal_mask, w_in, b_in, w_out, b_out, H)
    out = jax.block_until_ready(out)

    ref = _reference_mha(x, causal_mask, w_in, b_in, w_out, b_out, H)
    assert out.shape == (L, B, E) and out.dtype == x.dtype
    assert jnp.allclose(out, ref, atol=1e-2, rtol=1e-2), "mismatch vs reference"

    print("KERNEL_OK")
</pallas_src>

<mosaic_0001>
module attributes {stable_mosaic.version = 11 : i64} {
  func.func @_matmul_bias_t_kernel(%arg0: i32, %arg1: i32, %arg2: i32, %arg3: memref<16x32xf32, #tpu.memory_space<vmem>>, %arg4: memref<96x32xf32, #tpu.memory_space<vmem>>, %arg5: memref<1x96xf32, #tpu.memory_space<vmem>>, %arg6: memref<16x96xf32, #tpu.memory_space<vmem>>, %arg7: memref<16x96xf32, #tpu.memory_space<vmem>>) attributes {dimension_semantics = [#tpu.dimension_semantics<parallel>, #tpu.dimension_semantics<parallel>, #tpu.dimension_semantics<arbitrary>], iteration_bounds = array<i64: 1, 1, 1>, scalar_prefetch = 0 : i64, scratch_operands = 1 : i64, tpu.core_type = #tpu.core_type<tc>, window_params = [{transform_indices = @transform_0, window_bounds = array<i64: 16, 32>}, {transform_indices = @transform_1, window_bounds = array<i64: 96, 32>}, {transform_indices = @transform_2, window_bounds = array<i64: 1, 96>}, {transform_indices = @transform_3, window_bounds = array<i64: 16, 96>}]} {
    %c0_i32 = arith.constant 0 : i32
    %0 = arith.cmpi eq, %arg2, %c0_i32 : i32
    %1 = arith.extui %0 : i1 to i32
    %c0_i32_0 = arith.constant 0 : i32
    %2 = arith.cmpi ne, %1, %c0_i32_0 : i32
    scf.if %2 {
      %cst_10 = arith.constant 0.000000e+00 : f32
      %12 = vector.broadcast %cst_10 : f32 to vector<16x96xf32>
      %c0_11 = arith.constant 0 : index
      %c0_12 = arith.constant 0 : index
      %13 = vector.load %arg7[%c0_11, %c0_12] : memref<16x96xf32, #tpu.memory_space<vmem>>, vector<16x96xf32>
      tpu.vector_store %arg7[%c0_11, %c0_12], %12 {strides = array<i32>} : memref<16x96xf32, #tpu.memory_space<vmem>>, vector<16x96xf32>,
    } else {
    }
    %c0 = arith.constant 0 : index
    %c0_1 = arith.constant 0 : index
    %3 = vector.load %arg7[%c0, %c0_1] : memref<16x96xf32, #tpu.memory_space<vmem>>, vector<16x96xf32>
    %c0_2 = arith.constant 0 : index
    %c0_3 = arith.constant 0 : index
    %4 = vector.load %arg3[%c0_2, %c0_3] : memref<16x32xf32, #tpu.memory_space<vmem>>, vector<16x32xf32>
    %c0_4 = arith.constant 0 : index
    %c0_5 = arith.constant 0 : index
    %5 = vector.load %arg4[%c0_4, %c0_5] : memref<96x32xf32, #tpu.memory_space<vmem>>, vector<96x32xf32>
    %cst = arith.constant dense<0.000000e+00> : vector<16x96xf32>
    %6 = tpu.matmul %4, %5, %cst {dimension_numbers = #tpu.dot_dimension_numbers<[1], [1], [0], [0], [0, 0, 1, 0], [], []>} : vector<16x32xf32>, vector<96x32xf32>, vector<16x96xf32> -> vector<16x96xf32>
    %7 = arith.addf %3, %6 : vector<16x96xf32>
    %c0_6 = arith.constant 0 : index
    %c0_7 = arith.constant 0 : index
    %8 = vector.load %arg7[%c0_6, %c0_7] : memref<16x96xf32, #tpu.memory_space<vmem>>, vector<16x96xf32>
    tpu.vector_store %arg7[%c0_6, %c0_7], %7 {strides = array<i32>} : memref<16x96xf32, #tpu.memory_space<vmem>>, vector<16x96xf32>,
    %c0_i32_8 = arith.constant 0 : i32
    %9 = arith.cmpi eq, %arg2, %c0_i32_8 : i32
    %10 = arith.extui %9 : i1 to i32
    %c0_i32_9 = arith.constant 0 : i32
    %11 = arith.cmpi ne, %10, %c0_i32_9 : i32
    scf.if %11 {
      %c0_10 = arith.constant 0 : index
      %c0_11 = arith.constant 0 : index
      %12 = vector.load %arg7[%c0_10, %c0_11] : memref<16x96xf32, #tpu.memory_space<vmem>>, vector<16x96xf32>
      %c0_12 = arith.constant 0 : index
      %c0_13 = arith.constant 0 : index
      %13 = vector.load %arg5[%c0_12, %c0_13] : memref<1x96xf32, #tpu.memory_space<vmem>>, vector<1x96xf32>
      %14 = vector.broadcast %13 : vector<1x96xf32> to vector<16x96xf32>
      %15 = arith.addf %12, %14 : vector<16x96xf32>
      %c0_14 = arith.constant 0 : index
      %c0_15 = arith.constant 0 : index
      %16 = vector.load %arg6[%c0_14, %c0_15] : memref<16x96xf32, #tpu.memory_space<vmem>>, vector<16x96xf32>
      tpu.vector_store %arg6[%c0_14, %c0_15], %15 {strides = array<i32>} : memref<16x96xf32, #tpu.memory_space<vmem>>, vector<16x96xf32>,
    } else {
    }
    return
  }
  func.func @transform_0(%arg0: i32, %arg1: i32, %arg2: i32) -> (i32, i32) {
    %c0_i32 = arith.constant 0 : i32
    return %arg0, %arg2 : i32, i32
  }
  func.func @transform_1(%arg0: i32, %arg1: i32, %arg2: i32) -> (i32, i32) {
    %c0_i32 = arith.constant 0 : i32
    return %arg1, %arg2 : i32, i32
  }
  func.func @transform_2(%arg0: i32, %arg1: i32, %arg2: i32) -> (i32, i32) {
    %c0_i32 = arith.constant 0 : i32
    %c0_i32_0 = arith.constant 0 : i32
    return %c0_i32, %arg1 : i32, i32
  }
  func.func @transform_3(%arg0: i32, %arg1: i32, %arg2: i32) -> (i32, i32) {
    %c0_i32 = arith.constant 0 : i32
    return %arg0, %arg1 : i32, i32
  }
}

</mosaic_0001>

<bundles_post_ra>
// kernel: tpu_custom_call.1
= control target key start
LH: loop header
LB: loop body
LE: loop exit
PB: predicated region body
PF: predicated region fallthrough
CT: control target
= control target key end

     0   :  { %vm38_vm0 = vcmask 261120   ;;  %vm19_vm1 = vcmask 785408   ;;  %v313_v6 = vmov 0.0   ;;  %s432_s0 = inlined_call_operand.vmem [shape: f32[16,32], index: 0, kind: input, shape index: {}]   ;;  %s433_s1 = inlined_call_operand.vmem [shape: f32[96,32], index: 1, kind: input, shape index: {}]   ;;  %s434_s2 = inlined_call_operand.vmem [shape: f32[1,96], index: 2, kind: input, shape index: {}]   ;;  %s435_s3 = inlined_call_operand.hbm [shape: f32[16,96], index: 3, kind: output, shape index: {}]  }
   0x1   :  { %v26_v0 = vld [vmem:[%s433_s1] sm:$0xff]  ;;  %v27_v1 = vld [vmem:[%s433_s1 + $0x8] sm:$0xff]  ;;  %v28_v2 = vld [vmem:[%s433_s1 + $0x10] sm:$0xff]  ;;  %21 = vst.msk [vmem:[#allocation2 + $0x8] sm:$0xff] %vm19_vm1, %v313_v6 }
   0x2   :  { %v249_v3 = vpack.c.bf16 %v27_v1, %v26_v0  ;;  %vm348_vm2 = vmpackc.low %vm38_vm0, %vm38_vm0  ;;  %v29_v5 = vld [vmem:[%s433_s1 + $0x18] sm:$0xff]  ;;  %20 = vst.msk [vmem:[#allocation2] sm:$0xff] %vm19_vm1, %v313_v6  ;;  %v24_v8 = vld [vmem:[%s432_s0] sm:$0xff] }
   0x3   :  { %v255_v7 = vpack.c.bf16 %v29_v5, %v28_v2  ;;  %246 = vmatprep.mubr.msk.f32.mxu0 %vm38_vm0, %v24_v8 }
   0x4   :  { %251 = vmatprep.subr.msk.bf16.mxu0 %vm348_vm2, %v249_v3 }
   0x5   :  { %254 = vmatpush3.bf16.xpose.msk.msra.mxu0 %vm348_vm2, %v249_v3 }
   0x6   :  { %257 = vmatprep.subr.msk.bf16.mxu0 %vm348_vm2, %v255_v7 }
   0x7   :  { %8 = vsyncpa [#allocation4], 0  ;;  %v30_v9 = vld [vmem:[%s433_s1 + $0x20] sm:$0xff]  ;;  %v31_v10 = vld [vmem:[%s433_s1 + $0x28] sm:$0xff]  ;;  %s314_s14 = smov [#allocation3]  }
   0x8   :  { %v261_v11 = vpack.c.bf16 %v31_v10, %v30_v9  ;;  %v32_v12 = vld [vmem:[%s433_s1 + $0x30] sm:$0xff]  ;;  %v33_v13 = vld [vmem:[%s433_s1 + $0x38] sm:$0xff]  ;;  %v34_v15 = vld [vmem:[%s433_s1 + $0x40] sm:$0xff]  ;;  %s182_s15 = sshll.u32 %s314_s14, 4  ;;  %s183_s15 = int_to_ptr.vmem [resolvable:$true] %s182_s15 }
   0x9   :  { %v267_v14 = vpack.c.bf16 %v33_v13, %v32_v12  ;;  %v35_v16 = vld [vmem:[%s433_s1 + $0x48] sm:$0xff]  ;;  %v36_v18 = vld [vmem:[%s433_s1 + $0x50] sm:$0xff]  ;;  %v37_v19 = vld [vmem:[%s433_s1 + $0x58] sm:$0xff]  ;;  %p294_p1 = scmp.lt.s32.totalorder %s183_s15, %s183_s15 }
   0xa   :  { %v273_v17 = vpack.c.bf16 %v35_v16, %v34_v15  ;;  %v279_v20 = vpack.c.bf16 %v37_v19, %v36_v18  ;;  %v25_v21 = vld [vmem:[%s432_s0 + $0x8] sm:$0xff]  ;;  %v22_v23 = vld [vmem:[#allocation2] sm:$0xff]  ;;  %s289_s0 = scalar_lea.vmem %s183_s15, 256 }
   0xb   :  { %v23_v22 = vld [vmem:[#allocation2 + $0x8] sm:$0xff]  ;;  %v207_v28 = vld [vmem:[%s434_s2] ss:$0 sm:$0xff]  ;;  %p290_p0 = scmp.ne.s32.totalorder %s183_s15, %s289_s0  ;;  %p295_p2 = scmp.lt.s32.totalorder %s289_s0, %s289_s0 }
   0xd   :  { %260 = vmatpush3.bf16.xpose.msk.msra.mxu0 %vm348_vm2, %v255_v7  ;;  %p296_p3 = por %p295_p2, %p294_p1 }
   0xe   :  { %263 = vmatprep.subr.msk.bf16.mxu0 %vm348_vm2, %v261_v11 }
   0xf   :  { %p297_p4 = pnand %p296_p3, %p290_p0 }
  0x15   :  { %266 = vmatpush3.bf16.xpose.msk.msra.mxu0 %vm348_vm2, %v261_v11 }
  0x16   :  { %269 = vmatprep.subr.msk.bf16.mxu0 %vm348_vm2, %v267_v14 }
  0x1d   :  { %272 = vmatpush3.bf16.xpose.msk.msra.mxu0 %vm348_vm2, %v267_v14 }
  0x1e   :  { %275 = vmatprep.subr.msk.bf16.mxu0 %vm348_vm2, %v273_v17 }
  0x25   :  { %278 = vmatpush3.bf16.xpose.msk.msra.mxu0 %vm348_vm2, %v273_v17 }
  0x26   :  { %281 = vmatprep.subr.msk.bf16.mxu0 %vm348_vm2, %v279_v20 }
  0x2d   :  { %284 = vmatpush3.bf16.xpose.msk.msra.mxu0 %vm348_vm2, %v279_v20 }
  0x34   :  { %247 = vmatmul.mubr.msk.f32.vlgmr.msra.gmra.mrb[0].mxu0 %vm38_vm0, %v25_v21 }
 0x107   :  { %v248_v24 = vpop.f32.mrb[0].mxu0 }
 0x108   :  { %v157_v25 = vadd.f32 %v248_v24, %v23_v22  ;;  %v147_v26 = vpop.f32.mrb[1].mxu0 }
 0x109   :  { %v156_v27 = vadd.f32 %v147_v26, %v22_v23 }
 0x10a   :  { %160 = vst.msk [vmem:[#allocation2 + $0x8] sm:$0xff] %vm19_vm1, %v157_v25 }
 0x10b   :  { %159 = vst.msk [vmem:[#allocation2] sm:$0xff] %vm19_vm1, %v156_v27 }
 0x111   :  { %v165_v29 = vld [vmem:[#allocation2 + $0x8] sm:$0xff] }
 0x112   :  { %v164_v30 = vld [vmem:[#allocation2] sm:$0xff]  ;;  %v174_v31 = vadd.f32 %v207_v28, %v165_v29 }
 0x113   :  { %v173_v32 = vadd.f32 %v207_v28, %v164_v30 }
 0x114   :  { %176 = vst.msk [vmem:[#allocation3 + $0x8] sm:$0xff] %vm19_vm1, %v174_v31 }
 0x115   :  { %175 = vst.msk [vmem:[#allocation3] sm:$0xff] %vm19_vm1, %v173_v32 }
 0x116   :  { %300 = shalt.err (!%p297_p4)
}
 0x117   :  { %s301_s17 = scalar_lea.hbm %s435_s3, 256 }
 0x118   :  { %p302_p5 = scmp.ne.s32.totalorder %s435_s3, %s301_s17  ;;  %p305_p6 = scmp.lt.u32.totalorder %s301_s17, %s435_s3 }
 0x11a   :  { %p307_p7 = pnand %p305_p6, %p302_p5 }
 0x11c   :  { %310 = shalt.err (!%p307_p7)
}
 0x11d   :  { %s315_s22 = smov 128   ;;  %s316_s23 = smov 8  }
 0x11e   :  { %188 = dma.vmem_to_hbm [thread:$0]  %s183_s15, 256, %s435_s3, [#allocation4], %s315_s22, %s315_s22, %s316_s23  }
 0x11f   :  { %311 = dma.done.wait [#allocation4], 256  }
 0x120   :  { %312 = vsyncadd [#allocation4], 4294967040 }
 0x121   :  { %192 = vsyncpa [#allocation4], 1 }

</bundles_post_ra>
